<compile_context>
chip_gen: v5e
topology: v5e:2x2
jax: 0.10.0
libtpu: 0.0.40
codegen_flags: <defaults>
</compile_context>

<pallas_src>
import functools

import jax
import jax.numpy as jnp
from jax.experimental import pallas as pl
from jax.experimental.pallas import tpu as pltpu

# Ant-v3: observation dim = 111, action dim = 8, action_space.high[0] = 1.0
OBS_DIM = 111
ACT_DIM = 8
MAX_ACTION = 1.0
H1 = 512
H2 = 256

OBS_PAD = 128        # observation dim zero-padded to a full lane / MXU-K tile
OUT_PAD = 128        # output lanes padded so the final store is lane-dense
BATCH_GRANULE = 16   # bf16 sublane packing granule for the x / out blocks
DEFAULT_MAX_TILE_B = 2048
VMEM_LIMIT_BYTES = 48 * 1024 * 1024   # > v5e's 16 MiB default, < v7x's 64 MiB


def _cdiv(a, b):
    return (a + b - 1) // b


def _round_up(n, m):
    return _cdiv(n, m) * m


def _choose_batch_tiling(batch, max_tile_b):
    """Adaptive batch tiling: minimal padding, even split, >=2 steps when big."""
    pb = _round_up(batch, BATCH_GRANULE)
    n_tiles = _cdiv(pb, max_tile_b)
    # Give v7x's two TensorCores something to shard once the batch is big
    # enough to split into two >=256-row tiles (no-op cost elsewhere).
    if n_tiles == 1 and pb >= 2 * 256:
        n_tiles = 2
    tile_b = _round_up(_cdiv(pb, n_tiles), BATCH_GRANULE)
    padded_batch = tile_b * n_tiles
    return tile_b, padded_batch, n_tiles


def actor_kernel(x_ref, w1_ref, b1_ref, w2_ref, b2_ref, w3_ref, b3_ref, o_ref):
    # Layer 1: Linear(128, 512) + ReLU.  bf16 MXU inputs, f32 accumulation.
    h1 = jnp.dot(x_ref[...], w1_ref[...], preferred_element_type=jnp.float32)
    h1 = jnp.maximum(h1 + b1_ref[...], 0.0)

    # Layer 2: Linear(512, 256) + sigmoid.
    # sigmoid(z) = 1 / (1 + exp(-z)) with exp and approximate reciprocal both
    # on the EUP slot (idle next to the MXU); elementwise math stays f32.
    h2 = jnp.dot(h1.astype(jnp.bfloat16), w2_ref[...],
                 preferred_element_type=jnp.float32)
    z = h2 + b2_ref[...]
    h2 = pl.reciprocal(1.0 + jnp.exp(-z), approx=True)

    # Output layer: Linear(256, 128-padded), max_action * tanh, bf16 store.
    out = jnp.dot(h2.astype(jnp.bfloat16), w3_ref[...],
                  preferred_element_type=jnp.float32)
    o_ref[...] = (MAX_ACTION * jnp.tanh(out + b3_ref[...])).astype(jnp.bfloat16)


@functools.partial(jax.jit, static_argnames=("max_tile_b",))
def actor_forward(x, kparams, max_tile_b=DEFAULT_MAX_TILE_B):
    """x: (batch, OBS_DIM) f32.  kparams: padded/bf16 params from prepare_params."""
    w1p, b1, w2p, b2, w3p, b3p = kparams
    batch = x.shape[0]

    tile_b, padded_batch, n_tiles = _choose_batch_tiling(batch, max_tile_b)
    grid = (n_tiles,)

    # Fused pad + cast: build the padded activation slab directly in bf16
    # (halves input DMA bytes; padded rows produce discarded output rows).
    xp = jnp.zeros((padded_batch, OBS_PAD), jnp.bfloat16)
    xp = xp.at[:batch, :OBS_DIM].set(x.astype(jnp.bfloat16))

    const = lambda i: (0, 0)  # weights/biases stay resident across batch tiles
    weight_bytes = (w1p.size + w2p.size + w3p.size) * 2      # bf16
    bias_bytes = (b1.size + b2.size + b3p.size) * 4          # f32
    cost = pl.CostEstimate(
        flops=2 * padded_batch * (OBS_PAD * H1 + H1 * H2 + H2 * OUT_PAD),
        transcendentals=padded_batch * (2 * H2 + OUT_PAD),    # exp+recip, tanh
        bytes_accessed=(padded_batch * OBS_PAD * 2            # bf16 in
                        + padded_batch * OUT_PAD * 2          # bf16 out
                        + weight_bytes + bias_bytes),
    )

    out_pad = pl.pallas_call(
        actor_kernel,
        out_shape=jax.ShapeDtypeStruct((padded_batch, OUT_PAD), jnp.bfloat16),
        grid=grid,
        in_specs=[
            pl.BlockSpec((tile_b, OBS_PAD), lambda i: (i, 0)),   # x tile (bf16)
            pl.BlockSpec((OBS_PAD, H1), const),                  # W1 (resident)
            pl.BlockSpec((1, H1), const),                        # b1
            pl.BlockSpec((H1, H2), const),                       # W2
            pl.BlockSpec((1, H2), const),                        # b2
            pl.BlockSpec((H2, OUT_PAD), const),                  # W3 (padded)
            pl.BlockSpec((1, OUT_PAD), const),                   # b3 (padded)
        ],
        out_specs=pl.BlockSpec((tile_b, OUT_PAD), lambda i: (i, 0)),
        compiler_params=pltpu.CompilerParams(
            dimension_semantics=("parallel",),   # batch axis; v7x megacore
            vmem_limit_bytes=VMEM_LIMIT_BYTES,   # big tiles need > v5e's 16 MiB
        ),
        cost_estimate=cost,
    )(xp, w1p, b1, w2p, b2, w3p, b3p)

    # Lane-dense 128-wide bf16 slab -> true (batch, 8) f32 action output.
    return out_pad[:batch, :ACT_DIM].astype(jnp.float32)


def init_params(key):
    """f32 params mirroring the PyTorch module (weights stored as (in, out)).

    Weights ~ N(0, 0.1) as in .data.normal_(0, 0.1); biases use PyTorch's
    default U(-1/sqrt(fan_in), 1/sqrt(fan_in)).
    """
    ks = jax.random.split(key, 6)

    def lin(kw, kb, fan_in, fan_out):
        w = 0.1 * jax.random.normal(kw, (fan_in, fan_out), dtype=jnp.float32)
        bound = 1.0 / jnp.sqrt(float(fan_in))
        b = jax.random.uniform(kb, (1, fan_out), dtype=jnp.float32,
                               minval=-bound, maxval=bound)
        return w, b

    w1, b1 = lin(ks[0], ks[1], OBS_DIM, H1)
    w2, b2 = lin(ks[2], ks[3], H1, H2)
    w3, b3 = lin(ks[4], ks[5], H2, ACT_DIM)
    return (w1, b1, w2, b2, w3, b3)


def prepare_params(params):
    """Pad (111->128 on W1 rows, 8->128 on W3/b3 cols) and cast weights to bf16."""
    w1, b1, w2, b2, w3, b3 = params
    w1p = jnp.zeros((OBS_PAD, H1), jnp.float32).at[:OBS_DIM, :].set(w1)
    w3p = jnp.zeros((H2, OUT_PAD), jnp.float32).at[:, :ACT_DIM].set(w3)
    b3p = jnp.zeros((1, OUT_PAD), jnp.float32).at[:, :ACT_DIM].set(b3)
    return (w1p.astype(jnp.bfloat16), b1,
            w2.astype(jnp.bfloat16), b2,
            w3p.astype(jnp.bfloat16), b3p)


def actor_forward_ref_bf16(x, kparams):
    """Plain-JAX reference with the same bf16-weight / f32-accumulate / bf16-out
    recipe (exact sigmoid; the kernel's approximate reciprocal is the only
    remaining difference)."""
    w1p, b1, w2p, b2, w3p, b3p = kparams
    xp = jnp.zeros((x.shape[0], OBS_PAD), jnp.bfloat16).at[:, :OBS_DIM].set(
        x.astype(jnp.bfloat16))
    h1 = jnp.maximum(
        jnp.dot(xp, w1p, preferred_element_type=jnp.float32) + b1, 0.0)
    h2 = jax.nn.sigmoid(
        jnp.dot(h1.astype(jnp.bfloat16), w2p, preferred_element_type=jnp.float32)
        + b2)
    out = jnp.dot(h2.astype(jnp.bfloat16), w3p, preferred_element_type=jnp.float32)
    y = MAX_ACTION * jnp.tanh(out + b3p)
    return y.astype(jnp.bfloat16).astype(jnp.float32)[:, :ACT_DIM]


def actor_forward_ref_f32(x, params):
    """Full-precision reference of the original module semantics."""
    w1, b1, w2, b2, w3, b3 = params
    h1 = jnp.maximum(x @ w1 + b1, 0.0)
    h2 = jax.nn.sigmoid(h1 @ w2 + b2)
    return MAX_ACTION * jnp.tanh(h2 @ w3 + b3)


if __name__ == "__main__":
    key = jax.random.PRNGKey(0)
    k_params, k_x1, k_x2 = jax.random.split(key, 3)
    params = init_params(k_params)
    kparams = prepare_params(params)

    # Small check (single tile).
    batch = 8
    x = jax.random.normal(k_x1, (batch, OBS_DIM), dtype=jnp.float32)
    out = jax.block_until_ready(actor_forward(x, kparams))
    assert out.shape == (batch, ACT_DIM)
    ref_bf16 = actor_forward_ref_bf16(x, kparams)
    ref_f32 = actor_forward_ref_f32(x, params)
    assert jnp.allclose(out, ref_bf16, atol=1e-2, rtol=1e-2), "mismatch vs bf16 ref"
    assert jnp.allclose(out, ref_f32, atol=6e-2, rtol=6e-2), "mismatch vs f32 ref"

    # Mid-size check (exercises minimal batch padding + the adaptive tiling).
    batch2 = 300
    x2 = jax.random.normal(k_x2, (batch2, OBS_DIM), dtype=jnp.float32)
    out2 = jax.block_until_ready(actor_forward(x2, kparams))
    assert out2.shape == (batch2, ACT_DIM)
    ref2 = actor_forward_ref_bf16(x2, kparams)
    assert jnp.allclose(out2, ref2, atol=1e-2, rtol=1e-2), "mismatch vs bf16 ref (300)"

    # Multi-tile check (grid > 1, even split, non-divisible batch).
    batch3 = 2600
    x3 = jax.random.normal(k_x2, (batch3, OBS_DIM), dtype=jnp.float32)
    out3 = jax.block_until_ready(actor_forward(x3, kparams))
    assert out3.shape == (batch3, ACT_DIM)
    ref3 = actor_forward_ref_bf16(x3, kparams)
    assert jnp.allclose(out3, ref3, atol=1e-2, rtol=1e-2), "mismatch vs bf16 ref (tiled)"

    print("KERNEL_OK")
</pallas_src>

<mosaic_0001>
module attributes {stable_mosaic.version = 11 : i64} {
  func.func @actor_kernel(%arg0: i32, %arg1: memref<16x128xbf16, #tpu.memory_space<vmem>>, %arg2: memref<128x512xbf16, #tpu.memory_space<vmem>>, %arg3: memref<1x512xf32, #tpu.memory_space<vmem>>, %arg4: memref<512x256xbf16, #tpu.memory_space<vmem>>, %arg5: memref<1x256xf32, #tpu.memory_space<vmem>>, %arg6: memref<256x128xbf16, #tpu.memory_space<vmem>>, %arg7: memref<1x128xf32, #tpu.memory_space<vmem>>, %arg8: memref<16x128xbf16, #tpu.memory_space<vmem>>) attributes {dimension_semantics = [#tpu.dimension_semantics<parallel>], iteration_bounds = array<i64: 1>, scalar_prefetch = 0 : i64, scratch_operands = 0 : i64, tpu.core_type = #tpu.core_type<tc>, window_params = [{transform_indices = @transform_0, window_bounds = array<i64: 16, 128>}, {pipeline_mode = #tpu.pipeline_mode<synchronous>, transform_indices = @transform_1, window_bounds = array<i64: 128, 512>}, {pipeline_mode = #tpu.pipeline_mode<synchronous>, transform_indices = @transform_2, window_bounds = array<i64: 1, 512>}, {pipeline_mode = #tpu.pipeline_mode<synchronous>, transform_indices = @transform_3, window_bounds = array<i64: 512, 256>}, {pipeline_mode = #tpu.pipeline_mode<synchronous>, transform_indices = @transform_4, window_bounds = array<i64: 1, 256>}, {pipeline_mode = #tpu.pipeline_mode<synchronous>, transform_indices = @transform_5, window_bounds = array<i64: 256, 128>}, {pipeline_mode = #tpu.pipeline_mode<synchronous>, transform_indices = @transform_6, window_bounds = array<i64: 1, 128>}, {transform_indices = @transform_7, window_bounds = array<i64: 16, 128>}]} {
    %c0 = arith.constant 0 : index
    %c0_0 = arith.constant 0 : index
    %0 = vector.load %arg1[%c0, %c0_0] : memref<16x128xbf16, #tpu.memory_space<vmem>>, vector<16x128xbf16>
    %c0_1 = arith.constant 0 : index
    %c0_2 = arith.constant 0 : index
    %1 = vector.load %arg2[%c0_1, %c0_2] : memref<128x512xbf16, #tpu.memory_space<vmem>>, vector<128x512xbf16>
    %cst = arith.constant dense<0.000000e+00> : vector<16x512xf32>
    %2 = tpu.matmul %0, %1, %cst {dimension_numbers = #tpu.dot_dimension_numbers<[1], [0], [0], [1], [0, 0, 1, 1], [], []>} : vector<16x128xbf16>, vector<128x512xbf16>, vector<16x512xf32> -> vector<16x512xf32>
    %c0_3 = arith.constant 0 : index
    %c0_4 = arith.constant 0 : index
    %3 = vector.load %arg3[%c0_3, %c0_4] : memref<1x512xf32, #tpu.memory_space<vmem>>, vector<1x512xf32>
    %4 = vector.broadcast %3 : vector<1x512xf32> to vector<16x512xf32>
    %5 = arith.addf %2, %4 : vector<16x512xf32>
    %cst_5 = arith.constant 0.000000e+00 : f32
    %6 = vector.broadcast %cst_5 : f32 to vector<16x512xf32>
    %7 = arith.maximumf %5, %6 : vector<16x512xf32>
    %8 = arith.truncf %7 : vector<16x512xf32> to vector<16x512xbf16>
    %c0_6 = arith.constant 0 : index
    %c0_7 = arith.constant 0 : index
    %9 = vector.load %arg4[%c0_6, %c0_7] : memref<512x256xbf16, #tpu.memory_space<vmem>>, vector<512x256xbf16>
    %cst_8 = arith.constant dense<0.000000e+00> : vector<16x256xf32>
    %10 = tpu.matmul %8, %9, %cst_8 {dimension_numbers = #tpu.dot_dimension_numbers<[1], [0], [0], [1], [0, 0, 1, 1], [], []>} : vector<16x512xbf16>, vector<512x256xbf16>, vector<16x256xf32> -> vector<16x256xf32>
    %c0_9 = arith.constant 0 : index
    %c0_10 = arith.constant 0 : index
    %11 = vector.load %arg5[%c0_9, %c0_10] : memref<1x256xf32, #tpu.memory_space<vmem>>, vector<1x256xf32>
    %12 = vector.broadcast %11 : vector<1x256xf32> to vector<16x256xf32>
    %13 = arith.addf %10, %12 : vector<16x256xf32>
    %cst_11 = arith.constant 0.000000e+00 : f32
    %14 = vector.broadcast %cst_11 : f32 to vector<16x256xf32>
    %15 = arith.subf %14, %13 : vector<16x256xf32>
    %16 = math.exp %15 : vector<16x256xf32>
    %cst_12 = arith.constant 1.000000e+00 : f32
    %17 = vector.broadcast %cst_12 : f32 to vector<16x256xf32>
    %18 = arith.addf %17, %16 : vector<16x256xf32>
    %19 = tpu.reciprocal %18 {approx = true} : vector<16x256xf32> -> vector<16x256xf32>
    %20 = arith.truncf %19 : vector<16x256xf32> to vector<16x256xbf16>
    %c0_13 = arith.constant 0 : index
    %c0_14 = arith.constant 0 : index
    %21 = vector.load %arg6[%c0_13, %c0_14] : memref<256x128xbf16, #tpu.memory_space<vmem>>, vector<256x128xbf16>
    %cst_15 = arith.constant dense<0.000000e+00> : vector<16x128xf32>
    %22 = tpu.matmul %20, %21, %cst_15 {dimension_numbers = #tpu.dot_dimension_numbers<[1], [0], [0], [1], [0, 0, 1, 1], [], []>} : vector<16x256xbf16>, vector<256x128xbf16>, vector<16x128xf32> -> vector<16x128xf32>
    %c0_16 = arith.constant 0 : index
    %c0_17 = arith.constant 0 : index
    %23 = vector.load %arg7[%c0_16, %c0_17] : memref<1x128xf32, #tpu.memory_space<vmem>>, vector<1x128xf32>
    %24 = vector.broadcast %23 : vector<1x128xf32> to vector<16x128xf32>
    %25 = arith.addf %22, %24 : vector<16x128xf32>
    %26 = math.tanh %25 : vector<16x128xf32>
    %cst_18 = arith.constant 1.000000e+00 : f32
    %27 = vector.broadcast %cst_18 : f32 to vector<16x128xf32>
    %28 = arith.mulf %27, %26 : vector<16x128xf32>
    %29 = arith.truncf %28 : vector<16x128xf32> to vector<16x128xbf16>
    %c0_19 = arith.constant 0 : index
    %c0_20 = arith.constant 0 : index
    %30 = vector.load %arg8[%c0_19, %c0_20] : memref<16x128xbf16, #tpu.memory_space<vmem>>, vector<16x128xbf16>
    tpu.vector_store %arg8[%c0_19, %c0_20], %29 {strides = array<i32>} : memref<16x128xbf16, #tpu.memory_space<vmem>>, vector<16x128xbf16>,
    return
  }
  func.func @transform_0(%arg0: i32) -> (i32, i32) {
    %c0_i32 = arith.constant 0 : i32
    %c0_i32_0 = arith.constant 0 : i32
    return %arg0, %c0_i32 : i32, i32
  }
  func.func @transform_1(%arg0: i32) -> (i32, i32) {
    %c0_i32 = arith.constant 0 : i32
    %c0_i32_0 = arith.constant 0 : i32
    %c0_i32_1 = arith.constant 0 : i32
    return %c0_i32, %c0_i32_0 : i32, i32
  }
  func.func @transform_2(%arg0: i32) -> (i32, i32) {
    %c0_i32 = arith.constant 0 : i32
    %c0_i32_0 = arith.constant 0 : i32
    %c0_i32_1 = arith.constant 0 : i32
    return %c0_i32, %c0_i32_0 : i32, i32
  }
  func.func @transform_3(%arg0: i32) -> (i32, i32) {
    %c0_i32 = arith.constant 0 : i32
    %c0_i32_0 = arith.constant 0 : i32
    %c0_i32_1 = arith.constant 0 : i32
    return %c0_i32, %c0_i32_0 : i32, i32
  }
  func.func @transform_4(%arg0: i32) -> (i32, i32) {
    %c0_i32 = arith.constant 0 : i32
    %c0_i32_0 = arith.constant 0 : i32
    %c0_i32_1 = arith.constant 0 : i32
    return %c0_i32, %c0_i32_0 : i32, i32
  }
  func.func @transform_5(%arg0: i32) -> (i32, i32) {
    %c0_i32 = arith.constant 0 : i32
    %c0_i32_0 = arith.constant 0 : i32
    %c0_i32_1 = arith.constant 0 : i32
    return %c0_i32, %c0_i32_0 : i32, i32
  }
  func.func @transform_6(%arg0: i32) -> (i32, i32) {
    %c0_i32 = arith.constant 0 : i32
    %c0_i32_0 = arith.constant 0 : i32
    %c0_i32_1 = arith.constant 0 : i32
    return %c0_i32, %c0_i32_0 : i32, i32
  }
  func.func @transform_7(%arg0: i32) -> (i32, i32) {
    %c0_i32 = arith.constant 0 : i32
    %c0_i32_0 = arith.constant 0 : i32
    return %arg0, %c0_i32 : i32, i32
  }
}

</mosaic_0001>

<bundles_post_ra>
// kernel: actor_forward.1
= control target key start
LH: loop header
LB: loop body
LE: loop exit
PB: predicated region body
PF: predicated region fallthrough
CT: control target
= control target key end

     0   :  { %12 = vsyncpa [#allocation3], 0  ;;  %s1796_s0 = inlined_call_operand.vmem [shape: bf16[16,128], index: 0, kind: input, shape index: {}]   ;;  %s1797_s1 = inlined_call_operand.hbm [shape: bf16[128,512], index: 1, kind: input, shape index: {}]   ;;  %s1798_s2 = inlined_call_operand.vmem [shape: f32[1,512], index: 2, kind: input, shape index: {}]   ;;  %s1799_s3 = inlined_call_operand.hbm [shape: bf16[512,256], index: 3, kind: input, shape index: {}]   ;;  %s1800_s4 = inlined_call_operand.vmem [shape: f32[1,256], index: 4, kind: input, shape index: {}]   ;;  %s1801_s5 = inlined_call_operand.hbm [shape: bf16[256,128], index: 5, kind: input, shape index: {}]   ;;  %s1802_s6 = inlined_call_operand.vmem [shape: f32[1,128], index: 6, kind: input, shape index: {}]   ;;  %s1803_s7 = inlined_call_operand.vmem [shape: bf16[16,128], index: 7, kind: output, shape index: {}]  }
   0x1   :  { %13 = vsyncpa [#allocation5], 0  ;;  %s35_s26 = sshll.u32 %s1799_s3, 4  ;;  %s1723_s27 = smov [#allocation4]   ;;  %s36_s26 = int_to_ptr.hbm [resolvable:$true] %s35_s26 }
   0x2   :  { %s37_s28 = sshll.u32 %s1723_s27, 4  ;;  %s20_s8 = sshll.u32 %s1797_s1, 4  ;;  %s38_s28 = int_to_ptr.vmem [resolvable:$true] %s37_s28  ;;  %s21_s8 = int_to_ptr.hbm [resolvable:$true] %s20_s8 }
   0x3   :  { %s1724_s9 = smov 128   ;;  %s1725_s10 = smov 8  }
   0x4   :  { %43 = dma.hbm_to_vmem [thread:$0]  %s36_s26, 8192, %s38_s28, [#allocation5], %s1724_s9, %s1724_s9, %s1725_s10  }
   0x5   :  { %s1726_s11 = smov [#allocation2]   ;;  %s1727_s13 = smov 256  }
   0x6   :  { %s22_s12 = sshll.u32 %s1726_s11, 4  ;;  %s1728_s14 = smov 16   ;;  %s23_s12 = int_to_ptr.vmem [resolvable:$true] %s22_s12 }
   0x7   :  { %28 = dma.hbm_to_vmem [thread:$0]  %s21_s8, 4096, %s23_s12, [#allocation3], %s1727_s13, %s1727_s13, %s1728_s14  }
   0x8   :  { %s50_s16 = sshll.u32 %s1801_s5, 4  ;;  %s1729_s17 = smov [#allocation6]   ;;  %s51_s16 = int_to_ptr.hbm [resolvable:$true] %s50_s16 }
   0x9   :  { %s52_s18 = sshll.u32 %s1729_s17, 4  ;;  %s1730_s19 = smov 64   ;;  %s53_s18 = int_to_ptr.vmem [resolvable:$true] %s52_s18 }
   0xa   :  { %s1731_s1 = smov 4  }
   0xb   :  { %58 = dma.hbm_to_vmem [thread:$0]  %s51_s16, 2048, %s53_s18, [#allocation5], %s1730_s19, %s1730_s19, %s1731_s1  }
   0xc   :  { %1719 = dma.done.wait [#allocation3], 4096  }
   0xd   :  { %1720 = vsyncadd [#allocation3], 4294963200 }
   0xe   :  { %1721 = dma.done.wait [#allocation5], 10240  }
   0xf   :  { %1722 = vsyncadd [#allocation5], 4294957056  ;;  %v1165_v0 = vld [vmem:[#allocation2 + $0xe0] sm:$0xf]  ;;  %v1530_v1 = vld [vmem:[#allocation2 + $0xec] sm:$0xf0] }
  0x10   :  { %v1528_v2 = vld [vmem:[#allocation2 + $0xe4] sm:$0xf]  ;;  %v1166_v3 = vor.u32 %v1530_v1, %v1165_v0  ;;  %v1167_v4 = vld [vmem:[#allocation2 + $0xf0] sm:$0xf0]  ;;  %v1173_v5 = vld [vmem:[#allocation2 + $0xe8] sm:$0xf] }
  0x11   :  { %v1531_v6 = vld [vmem:[#allocation2 + $0xf4] sm:$0xf0]  ;;  %v1170_v7 = vor.u32 %v1528_v2, %v1167_v4  ;;  %v1529_v9 = vld [vmem:[#allocation2 + $0xec] sm:$0xf]  ;;  %v1175_v10 = vld [vmem:[#allocation2 + $0xf8] sm:$0xf0] }
  0x12   :  { %v1174_v8 = vor.u32 %v1531_v6, %v1173_v5  ;;  %v1149_v11 = vld [vmem:[#allocation2 + $0xc0] sm:$0xf]  ;;  %283 = vmatpush.bf16.msra.mxu0 %v1166_v3  ;;  %v1178_v12 = vor.u32 %v1529_v9, %v1175_v10  ;;  %v1526_v13 = vld [vmem:[#allocation2 + $0xcc] sm:$0xf0]  ;;  %v1524_v14 = vld [vmem:[#allocation2 + $0xc4] sm:$0xf] }
  0x13   :  { %v1151_v15 = vld [vmem:[#allocation2 + $0xd0] sm:$0xf0]  ;;  %297 = vmatpush.bf16.msra.mxu1 %v1170_v7  ;;  %v1150_v16 = vor.u32 %v1526_v13, %v1149_v11  ;;  %v1157_v18 = vld [vmem:[#allocation2 + $0xc8] sm:$0xf]  ;;  %v1527_v19 = vld [vmem:[#allocation2 + $0xd4] sm:$0xf0] }
  0x14   :  { %311 = vmatpush.bf16.msra.mxu2 %v1174_v8  ;;  %v1154_v17 = vor.u32 %v1524_v14, %v1151_v15  ;;  %v1525_v20 = vld [vmem:[#allocation2 + $0xcc] sm:$0xf]  ;;  %325 = vmatpush.bf16.msra.mxu3 %v1178_v12  ;;  %v1158_v21 = vor.u32 %v1527_v19, %v1157_v18  ;;  %v1159_v22 = vld [vmem:[#allocation2 + $0xd8] sm:$0xf0]  ;;  %v1133_v23 = vld [vmem:[#allocation2 + $0xa0] sm:$0xf] }
  0x15   :  { %v1522_v24 = vld [vmem:[#allocation2 + $0xac] sm:$0xf0]  ;;  %v1162_v25 = vor.u32 %v1525_v20, %v1159_v22  ;;  %v1520_v26 = vld [vmem:[#allocation2 + $0xa4] sm:$0xf]  ;;  %v1135_v27 = vld [vmem:[#allocation2 + $0xb0] sm:$0xf0] }
  0x16   :  { %v1141_v28 = vld [vmem:[#allocation2 + $0xa8] sm:$0xf]  ;;  %284 = vmatpush.bf16.msra.mxu0 %v1150_v16  ;;  %v1134_v29 = vor.u32 %v1522_v24, %v1133_v23  ;;  %v1523_v30 = vld [vmem:[#allocation2 + $0xb4] sm:$0xf0]  ;;  %v1521_v31 = vld [vmem:[#allocation2 + $0xac] sm:$0xf]  ;;  %v1138_v33 = vor.u32 %v1520_v26, %v1135_v27 }
  0x17   :  { %v1143_v32 = vld [vmem:[#allocation2 + $0xb8] sm:$0xf0]  ;;  %298 = vmatpush.bf16.msra.mxu1 %v1154_v17  ;;  %v1142_v34 = vor.u32 %v1523_v30, %v1141_v28  ;;  %v1117_v35 = vld [vmem:[#allocation2 + $0x80] sm:$0xf]  ;;  %v1518_v36 = vld [vmem:[#allocation2 + $0x8c] sm:$0xf0] }
  0x18   :  { %312 = vmatpush.bf16.msra.mxu2 %v1158_v21  ;;  %v1516_v37 = vld [vmem:[#allocation2 + $0x84] sm:$0xf]  ;;  %326 = vmatpush.bf16.msra.mxu3 %v1162_v25  ;;  %v1146_v38 = vor.u32 %v1521_v31, %v1143_v32  ;;  %v1119_v39 = vld [vmem:[#allocation2 + $0x90] sm:$0xf0]  ;;  %v1125_v40 = vld [vmem:[#allocation2 + $0x88] sm:$0xf]  ;;  %v1118_v44 = vor.u32 %v1518_v36, %v1117_v35 }
  0x19   :  { %v1519_v41 = vld [vmem:[#allocation2 + $0x94] sm:$0xf0]  ;;  %v1517_v42 = vld [vmem:[#allocation2 + $0x8c] sm:$0xf]  ;;  %v1127_v43 = vld [vmem:[#allocation2 + $0x98] sm:$0xf0]  ;;  %v1122_v45 = vor.u32 %v1516_v37, %v1119_v39 }
  0x1a   :  { %285 = vmatpush.bf16.msra.mxu0 %v1134_v29  ;;  %v1126_v46 = vor.u32 %v1519_v41, %v1125_v40  ;;  %v1101_v47 = vld [vmem:[#allocation2 + $0x60] sm:$0xf]  ;;  %v1514_v48 = vld [vmem:[#allocation2 + $0x6c] sm:$0xf0]  ;;  %v1512_v49 = vld [vmem:[#allocation2 + $0x64] sm:$0xf]  ;;  %v1130_v50 = vor.u32 %v1517_v42, %v1127_v43 }
  0x1b   :  { %299 = vmatpush.bf16.msra.mxu1 %v1138_v33  ;;  %v1103_v51 = vld [vmem:[#allocation2 + $0x70] sm:$0xf0]  ;;  %v1109_v52 = vld [vmem:[#allocation2 + $0x68] sm:$0xf]  ;;  %v1515_v53 = vld [vmem:[#allocation2 + $0x74] sm:$0xf0]  ;;  %v1102_v56 = vor.u32 %v1514_v48, %v1101_v47 }
  0x1c   :  { %313 = vmatpush.bf16.msra.mxu2 %v1142_v34  ;;  %327 = vmatpush.bf16.msra.mxu3 %v1146_v38  ;;  %v1513_v54 = vld [vmem:[#allocation2 + $0x6c] sm:$0xf]  ;;  %v1111_v55 = vld [vmem:[#allocation2 + $0x78] sm:$0xf0]  ;;  %v1106_v57 = vor.u32 %v1512_v49, %v1103_v51  ;;  %v1110_v58 = vor.u32 %v1515_v53, %v1109_v52  ;;  %v1085_v59 = vld [vmem:[#allocation2 + $0x40] sm:$0xf] }
  0x1d   :  { %v1510_v60 = vld [vmem:[#allocation2 + $0x4c] sm:$0xf0]  ;;  %v1508_v61 = vld [vmem:[#allocation2 + $0x44] sm:$0xf]  ;;  %v1114_v62 = vor.u32 %v1513_v54, %v1111_v55  ;;  %v1087_v63 = vld [vmem:[#allocation2 + $0x50] sm:$0xf0] }
  0x1e   :  { %286 = vmatpush.bf16.msra.mxu0 %v1118_v44  ;;  %v1093_v0 = vld [vmem:[#allocation2 + $0x48] sm:$0xf]  ;;  %v1511_v1 = vld [vmem:[#allocation2 + $0x54] sm:$0xf0]  ;;  %v1509_v2 = vld [vmem:[#allocation2 + $0x4c] sm:$0xf]  ;;  %v1086_v4 = vor.u32 %v1510_v60, %v1085_v59  ;;  %v1090_v5 = vor.u32 %v1508_v61, %v1087_v63 }
  0x1f   :  { %300 = vmatpush.bf16.msra.mxu1 %v1122_v45  ;;  %v1095_v3 = vld [vmem:[#allocation2 + $0x58] sm:$0xf0]  ;;  %v1094_v6 = vor.u32 %v1511_v1, %v1093_v0  ;;  %v1069_v7 = vld [vmem:[#allocation2 + $0x20] sm:$0xf]  ;;  %v1506_v8 = vld [vmem:[#allocation2 + $0x2c] sm:$0xf0] }
  0x20   :  { %314 = vmatpush.bf16.msra.mxu2 %v1126_v46  ;;  %328 = vmatpush.bf16.msra.mxu3 %v1130_v50  ;;  %v1504_v9 = vld [vmem:[#allocation2 + $0x24] sm:$0xf]  ;;  %v1098_v10 = vor.u32 %v1509_v2, %v1095_v3  ;;  %v1071_v11 = vld [vmem:[#allocation2 + $0x30] sm:$0xf0]  ;;  %v1077_v12 = vld [vmem:[#allocation2 + $0x28] sm:$0xf]  ;;  %v1070_v16 = vor.u32 %v1506_v8, %v1069_v7 }
  0x21   :  { %v1507_v13 = vld [vmem:[#allocation2 + $0x34] sm:$0xf0]  ;;  %v1505_v14 = vld [vmem:[#allocation2 + $0x2c] sm:$0xf]  ;;  %v1079_v15 = vld [vmem:[#allocation2 + $0x38] sm:$0xf0]  ;;  %v1074_v18 = vor.u32 %v1504_v9, %v1071_v11 }
  0x22   :  { %287 = vmatpush.bf16.msra.mxu0 %v1102_v56  ;;  %v1053_v17 = vld [vmem:[#allocation2] sm:$0xf]  ;;  %v1078_v19 = vor.u32 %v1507_v13, %v1077_v12  ;;  %v1502_v20 = vld [vmem:[#allocation2 + $0xc] sm:$0xf0]  ;;  %v1500_v21 = vld [vmem:[#allocation2 + $0x4] sm:$0xf]  ;;  %v1082_v23 = vor.u32 %v1505_v14, %v1079_v15 }
  0x23   :  { %301 = vmatpush.bf16.msra.mxu1 %v1106_v57  ;;  %v1055_v22 = vld [vmem:[#allocation2 + $0x10] sm:$0xf0]  ;;  %v1061_v24 = vld [vmem:[#allocation2 + $0x8] sm:$0xf]  ;;  %v1503_v25 = vld [vmem:[#allocation2 + $0x14] sm:$0xf0]  ;;  %v1054_v30 = vor.u32 %v1502_v20, %v1053_v17 }
  0x24   :  { %315 = vmatpush.bf16.msra.mxu2 %v1110_v58  ;;  %329 = vmatpush.bf16.msra.mxu3 %v1114_v62  ;;  %v1501_v26 = vld [vmem:[#allocation2 + $0xc] sm:$0xf]  ;;  %v1063_v27 = vld [vmem:[#allocation2 + $0x18] sm:$0xf0]  ;;  %v1237_v28 = vld [vmem:[#allocation4 + $0x70] sm:$0xf]  ;;  %v1058_v33 = vor.u32 %v1500_v21, %v1055_v22  ;;  %v1062_v34 = vor.u32 %v1503_v25, %v1061_v24 }
  0x25   :  { %v1547_v29 = vld [vmem:[#allocation4 + $0x74] sm:$0xf0]  ;;  %v1301_v31 = vld [vmem:[#allocation4 + $0xf0] sm:$0xf]  ;;  %v1499_v35 = vld [vmem:[%s1796_s0] sm:$0xff]  ;;  %v1066_v36 = vor.u32 %v1501_v26, %v1063_v27 }
  0x26   :  { %288 = vmatpush.bf16.msra.mxu0 %v1086_v4  ;;  %v1563_v32 = vld [vmem:[#allocation4 + $0xf4] sm:$0xf0]  ;;  %v1238_v37 = vor.u32 %v1547_v29, %v1237_v28  ;;  %v1229_v38 = vld [vmem:[#allocation4 + $0x60] sm:$0xf]  ;;  %v1365_v39 = vld [vmem:[#allocation4 + $0x170] sm:$0xf] }
  0x27   :  { %302 = vmatpush.bf16.msra.mxu1 %v1090_v5  ;;  %v1579_v40 = vld [vmem:[#allocation4 + $0x174] sm:$0xf0]  ;;  %v1302_v41 = vor.u32 %v1563_v32, %v1301_v31  ;;  %v1545_v42 = vld [vmem:[#allocation4 + $0x64] sm:$0xf0]  ;;  %v1429_v43 = vld [vmem:[#allocation4 + $0x1f0] sm:$0xf] }
  0x28   :  { %316 = vmatpush.bf16.msra.mxu2 %v1094_v6  ;;  %330 = vmatpush.bf16.msra.mxu3 %v1098_v10  ;;  %v1595_v44 = vld [vmem:[#allocation4 + $0x1f4] sm:$0xf0]  ;;  %v1293_v45 = vld [vmem:[#allocation4 + $0xe0] sm:$0xf]  ;;  %v1561_v46 = vld [vmem:[#allocation4 + $0xe4] sm:$0xf0]  ;;  %v1366_v47 = vor.u32 %v1579_v40, %v1365_v39  ;;  %v1230_v48 = vor.u32 %v1545_v42, %v1229_v38 }
  0x29   :  { %v1430_v49 = vor.u32 %v1595_v44, %v1429_v43  ;;  %v1221_v50 = vld [vmem:[#allocation4 + $0x50] sm:$0xf]  ;;  %v1357_v51 = vld [vmem:[#allocation4 + $0x160] sm:$0xf]  ;;  %v1577_v52 = vld [vmem:[#allocation4 + $0x164] sm:$0xf0]  ;;  %v1294_v53 = vor.u32 %v1561_v46, %v1293_v45 }
  0x2a   :  { %289 = vmatpush.bf16.msra.mxu0 %v1070_v16  ;;  %v1543_v54 = vld [vmem:[#allocation4 + $0x54] sm:$0xf0]  ;;  %v1421_v55 = vld [vmem:[#allocation4 + $0x1e0] sm:$0xf]  ;;  %v1593_v56 = vld [vmem:[#allocation4 + $0x1e4] sm:$0xf0]  ;;  %v1358_v59 = vor.u32 %v1577_v52, %v1357_v51 }
  0x2b   :  { %303 = vmatpush.bf16.msra.mxu1 %v1074_v18  ;;  %v1285_v57 = vld [vmem:[#allocation4 + $0xd0] sm:$0xf]  ;;  %v1559_v58 = vld [vmem:[#allocation4 + $0xd4] sm:$0xf0]  ;;  %v1222_v60 = vor.u32 %v1543_v54, %v1221_v50  ;;  %v1422_v61 = vor.u32 %v1593_v56, %v1421_v55  ;;  %v1213_v62 = vld [vmem:[#allocation4 + $0x40] sm:$0xf] }
  0x2c   :  { %317 = vmatpush.bf16.msra.mxu2 %v1078_v19  ;;  %331 = vmatpush.bf16.msra.mxu3 %v1082_v23  ;;  %v1349_v63 = vld [vmem:[#allocation4 + $0x150] sm:$0xf]  ;;  %v1575_v0 = vld [vmem:[#allocation4 + $0x154] sm:$0xf0]  ;;  %v1286_v1 = vor.u32 %v1559_v58, %v1285_v57  ;;  %v1541_v2 = vld [vmem:[#allocation4 + $0x44] sm:$0xf0] }
  0x2d   :  { %v1413_v3 = vld [vmem:[#allocation4 + $0x1d0] sm:$0xf]  ;;  %v1591_v4 = vld [vmem:[#allocation4 + $0x1d4] sm:$0xf0]  ;;  %v1277_v5 = vld [vmem:[#allocation4 + $0xc0] sm:$0xf]  ;;  %v1350_v7 = vor.u32 %v1575_v0, %v1349_v63  ;;  %v1214_v8 = vor.u32 %v1541_v2, %v1213_v62 }
  0x2e   :  { %290 = vmatpush.bf16.msra.mxu0 %v1054_v30  ;;  %v1557_v6 = vld [vmem:[#allocation4 + $0xc4] sm:$0xf0]  ;;  %v1414_v9 = vor.u32 %v1591_v4, %v1413_v3  ;;  %v1205_v10 = vld [vmem:[#allocation4 + $0x30] sm:$0xf]  ;;  %v1341_v11 = vld [vmem:[#allocation4 + $0x140] sm:$0xf] }
  0x2f   :  { %304 = vmatpush.bf16.msra.mxu1 %v1058_v33  ;;  %v1573_v12 = vld [vmem:[#allocation4 + $0x144] sm:$0xf0]  ;;  %v1278_v13 = vor.u32 %v1557_v6, %v1277_v5  ;;  %v1539_v14 = vld [vmem:[#allocation4 + $0x34] sm:$0xf0]  ;;  %v1405_v15 = vld [vmem:[#allocation4 + $0x1c0] sm:$0xf] }
  0x30   :  { %318 = vmatpush.bf16.msra.mxu2 %v1062_v34  ;;  %332 = vmatpush.bf16.msra.mxu3 %v1066_v36  ;;  %v1589_v16 = vld [vmem:[#allocation4 + $0x1c4] sm:$0xf0]  ;;  %v1269_v17 = vld [vmem:[#allocation4 + $0xb0] sm:$0xf]  ;;  %v1555_v18 = vld [vmem:[#allocation4 + $0xb4] sm:$0xf0]  ;;  %v1342_v19 = vor.u32 %v1573_v12, %v1341_v11  ;;  %v1206_v20 = vor.u32 %v1539_v14, %v1205_v10 }
  0x31   :  { %291 = vmatmul.bf16.vlgmr.msra.gmra.mxu0 %v1499_v35  ;;  %v1406_v21 = vor.u32 %v1589_v16, %v1405_v15  ;;  %v1197_v22 = vld [vmem:[#allocation4 + $0x20] sm:$0xf]  ;;  %v1333_v23 = vld [vmem:[#allocation4 + $0x130] sm:$0xf]  ;;  %v1571_v24 = vld [vmem:[#allocation4 + $0x134] sm:$0xf0]  ;;  %v1270_v25 = vor.u32 %v1555_v18, %v1269_v17 }
  0x32   :  { %741 = vmatpush.bf16.msrb.mxu0 %v1238_v37  ;;  %305 = vmatmul.bf16.vlgmr.msra.gmra.mxu1 %v1499_v35  ;;  %v1537_v26 = vld [vmem:[#allocation4 + $0x24] sm:$0xf0]  ;;  %v1397_v27 = vld [vmem:[#allocation4 + $0x1b0] sm:$0xf]  ;;  %v1587_v28 = vld [vmem:[#allocation4 + $0x1b4] sm:$0xf0]  ;;  %v1334_v31 = vor.u32 %v1571_v24, %v1333_v23 }
  0x33   :  { %755 = vmatpush.bf16.msrb.mxu1 %v1302_v41  ;;  %319 = vmatmul.bf16.vlgmr.msra.gmra.mxu2 %v1499_v35  ;;  %v1261_v29 = vld [vmem:[#allocation4 + $0xa0] sm:$0xf]  ;;  %v1553_v30 = vld [vmem:[#allocation4 + $0xa4] sm:$0xf0]  ;;  %v1198_v32 = vor.u32 %v1537_v26, %v1197_v22  ;;  %v1398_v33 = vor.u32 %v1587_v28, %v1397_v27  ;;  %v1189_v34 = vld [vmem:[#allocation4 + $0x10] sm:$0xf] }
  0x34   :  { %333 = vmatmul.bf16.vlgmr.msra.gmra.mxu3 %v1499_v35  ;;  %769 = vmatpush.bf16.msrb.mxu2 %v1366_v47  ;;  %v1325_v35 = vld [vmem:[#allocation4 + $0x120] sm:$0xf]  ;;  %v1569_v36 = vld [vmem:[#allocation4 + $0x124] sm:$0xf0]  ;;  %v1262_v37 = vor.u32 %v1553_v30, %v1261_v29  ;;  %v1535_v38 = vld [vmem:[#allocation4 + $0x14] sm:$0xf0] }
  0x35   :  { %783 = vmatpush.bf16.msrb.mxu3 %v1430_v49  ;;  %v1389_v39 = vld [vmem:[#allocation4 + $0x1a0] sm:$0xf]  ;;  %v1585_v40 = vld [vmem:[#allocation4 + $0x1a4] sm:$0xf0]  ;;  %v1253_v41 = vld [vmem:[#allocation4 + $0x90] sm:$0xf]  ;;  %v1326_v43 = vor.u32 %v1569_v36, %v1325_v35  ;;  %v1190_v44 = vor.u32 %v1535_v38, %v1189_v34 }
  0x36   :  { %742 = vmatpush.bf16.msrb.mxu0 %v1230_v48  ;;  %v1551_v42 = vld [vmem:[#allocation4 + $0x94] sm:$0xf0]  ;;  %v1390_v45 = vor.u32 %v1585_v40, %v1389_v39  ;;  %v1181_v47 = vld [vmem:[#allocation4] sm:$0xf]  ;;  %v1533_v48 = vld [vmem:[#allocation4 + $0x4] sm:$0xf0] }
  0x37   :  { %756 = vmatpush.bf16.msrb.mxu1 %v1294_v53  ;;  %v1254_v46 = vor.u32 %v1551_v42, %v1253_v41  ;;  %v1245_v49 = vld [vmem:[#allocation4 + $0x80] sm:$0xf]  ;;  %v1549_v50 = vld [vmem:[#allocation4 + $0x84] sm:$0xf0]  ;;  %v1182_v51 = vor.u32 %v1533_v48, %v1181_v47  ;;  %v1546_v53 = vld [vmem:[#allocation4 + $0x74] sm:$0xf] }
  0x38   :  { %770 = vmatpush.bf16.msrb.mxu2 %v1358_v59  ;;  %v1246_v52 = vor.u32 %v1549_v50, %v1245_v49  ;;  %v1239_v54 = vld [vmem:[#allocation4 + $0x78] sm:$0xf0]  ;;  %v1562_v55 = vld [vmem:[#allocation4 + $0xf4] sm:$0xf]  ;;  %v1317_v58 = vld [vmem:[#allocation4 + $0x110] sm:$0xf] }
  0x39   :  { %784 = vmatpush.bf16.msrb.mxu3 %v1422_v61  ;;  %v1242_v56 = vor.u32 %v1546_v53, %v1239_v54  ;;  %v1303_v57 = vld [vmem:[#allocation4 + $0xf8] sm:$0xf0]  ;;  %v1567_v59 = vld [vmem:[#allocation4 + $0x114] sm:$0xf0]  ;;  %v1381_v62 = vld [vmem:[#allocation4 + $0x190] sm:$0xf] }
  0x3a   :  { %743 = vmatpush.bf16.msrb.mxu0 %v1222_v60  ;;  %v1306_v60 = vor.u32 %v1562_v55, %v1303_v57  ;;  %v1318_v61 = vor.u32 %v1567_v59, %v1317_v58  ;;  %v1583_v63 = vld [vmem:[#allocation4 + $0x194] sm:$0xf0]  ;;  %v1231_v2 = vld [vmem:[#allocation4 + $0x68] sm:$0xf0]  ;;  %v1560_v4 = vld [vmem:[#allocation4 + $0xe4] sm:$0xf] }
  0x3b   :  { %757 = vmatpush.bf16.msrb.mxu1 %v1286_v1  ;;  %v1382_v0 = vor.u32 %v1583_v63, %v1381_v62  ;;  %v1544_v1 = vld [vmem:[#allocation4 + $0x64] sm:$0xf]  ;;  %v1295_v5 = vld [vmem:[#allocation4 + $0xe8] sm:$0xf0]  ;;  %v1309_v6 = vld [vmem:[#allocation4 + $0x100] sm:$0xf] }
  0x3c   :  { %771 = vmatpush.bf16.msrb.mxu2 %v1350_v7  ;;  %v1234_v3 = vor.u32 %v1544_v1, %v1231_v2  ;;  %v1298_v7 = vor.u32 %v1560_v4, %v1295_v5  ;;  %v1581_v10 = vld [vmem:[#allocation4 + $0x184] sm:$0xf0]  ;;  %v1367_v14 = vld [vmem:[#allocation4 + $0x178] sm:$0xf0]  ;;  %v1594_v16 = vld [vmem:[#allocation4 + $0x1f4] sm:$0xf] }
  0x3d   :  { %785 = vmatpush.bf16.msrb.mxu3 %v1414_v9  ;;  %v1373_v9 = vld [vmem:[#allocation4 + $0x180] sm:$0xf]  ;;  %v1431_v17 = vld [vmem:[#allocation4 + $0x1f8] sm:$0xf0]  ;;  %v1542_v18 = vld [vmem:[#allocation4 + $0x54] sm:$0xf] }
  0x3e   :  { %744 = vmatpush.bf16.msrb.mxu0 %v1214_v8  ;;  %v1565_v8 = vld [vmem:[#allocation4 + $0x104] sm:$0xf0]  ;;  %v1374_v12 = vor.u32 %v1581_v10, %v1373_v9  ;;  %v1287_v22 = vld [vmem:[#allocation4 + $0xd8] sm:$0xf0]  ;;  %v1359_v26 = vld [vmem:[#allocation4 + $0x168] sm:$0xf0] }
  0x3f   :  { %758 = vmatpush.bf16.msrb.mxu1 %v1278_v13  ;;  %v1310_v11 = vor.u32 %v1565_v8, %v1309_v6  ;;  %v1578_v13 = vld [vmem:[#allocation4 + $0x174] sm:$0xf]  ;;  %v1592_v28 = vld [vmem:[#allocation4 + $0x1e4] sm:$0xf]  ;;  %v1423_v29 = vld [vmem:[#allocation4 + $0x1e8] sm:$0xf0] }
  0x40   :  { %772 = vmatpush.bf16.msrb.mxu2 %v1342_v19  ;;  %v1370_v15 = vor.u32 %v1578_v13, %v1367_v14  ;;  %v1434_v19 = vor.u32 %v1594_v16, %v1431_v17  ;;  %v1426_v30 = vor.u32 %v1592_v28, %v1423_v29  ;;  %v1279_v35 = vld [vmem:[#allocation4 + $0xc8] sm:$0xf0]  ;;  %v1351_v38 = vld [vmem:[#allocation4 + $0x158] sm:$0xf0]  ;;  %v1590_v39 = vld [vmem:[#allocation4 + $0x1d4] sm:$0xf] }
  0x41   :  { %786 = vmatpush.bf16.msrb.mxu3 %v1406_v21  ;;  %v1558_v21 = vld [vmem:[#allocation4 + $0xd4] sm:$0xf]  ;;  %v1415_v41 = vld [vmem:[#allocation4 + $0x1d8] sm:$0xf0]  ;;  %v1572_v49 = vld [vmem:[#allocation4 + $0x144] sm:$0xf] }
  0x42   :  { %745 = vmatpush.bf16.msrb.mxu0 %v1206_v20  ;;  %v1223_v20 = vld [vmem:[#allocation4 + $0x58] sm:$0xf0]  ;;  %v1290_v24 = vor.u32 %v1558_v21, %v1287_v22  ;;  %v1418_v42 = vor.u32 %v1590_v39, %v1415_v41  ;;  %v1343_v50 = vld [vmem:[#allocation4 + $0x148] sm:$0xf0]  ;;  %v1536_v55 = vld [vmem:[#allocation4 + $0x24] sm:$0xf] }
  0x43   :  { %759 = vmatpush.bf16.msrb.mxu1 %v1270_v25  ;;  %v1226_v23 = vor.u32 %v1542_v18, %v1223_v20  ;;  %v1576_v25 = vld [vmem:[#allocation4 + $0x164] sm:$0xf]  ;;  %v1271_v47 = vld [vmem:[#allocation4 + $0xb8] sm:$0xf0]  ;;  %v1407_v53 = vld [vmem:[#allocation4 + $0x1c8] sm:$0xf0] }
  0x44   :  { %773 = vmatpush.bf16.msrb.mxu2 %v1334_v31  ;;  %v1362_v27 = vor.u32 %v1576_v25, %v1359_v26  ;;  %v1540_v31 = vld [vmem:[#allocation4 + $0x44] sm:$0xf]  ;;  %v1263_v59 = vld [vmem:[#allocation4 + $0xa8] sm:$0xf0]  ;;  %v1335_v62 = vld [vmem:[#allocation4 + $0x138] sm:$0xf0] }
  0x45   :  { %787 = vmatpush.bf16.msrb.mxu3 %v1398_v33  ;;  %v1556_v33 = vld [vmem:[#allocation4 + $0xc4] sm:$0xf]  ;;  %v1586_v63 = vld [vmem:[#allocation4 + $0x1b4] sm:$0xf]  ;;  %v1399_v1 = vld [vmem:[#allocation4 + $0x1b8] sm:$0xf0] }
  0x46   :  { %746 = vmatpush.bf16.msrb.mxu0 %v1198_v32  ;;  %v1215_v32 = vld [vmem:[#allocation4 + $0x48] sm:$0xf0]  ;;  %v1282_v36 = vor.u32 %v1556_v33, %v1279_v35  ;;  %v1552_v57 = vld [vmem:[#allocation4 + $0xa4] sm:$0xf]  ;;  %v1402_v2 = vor.u32 %v1586_v63, %v1399_v1  ;;  %v1191_v4 = vld [vmem:[#allocation4 + $0x18] sm:$0xf0] }
  0x47   :  { %760 = vmatpush.bf16.msrb.mxu1 %v1262_v37  ;;  %v1218_v34 = vor.u32 %v1540_v31, %v1215_v32  ;;  %v1574_v37 = vld [vmem:[#allocation4 + $0x154] sm:$0xf]  ;;  %v1568_v8 = vld [vmem:[#allocation4 + $0x124] sm:$0xf]  ;;  %v1327_v9 = vld [vmem:[#allocation4 + $0x128] sm:$0xf0] }
  0x48   :  { %774 = vmatpush.bf16.msrb.mxu2 %v1326_v43  ;;  %v1354_v40 = vor.u32 %v1574_v37, %v1351_v38  ;;  %v1538_v43 = vld [vmem:[#allocation4 + $0x34] sm:$0xf]  ;;  %v1391_v13 = vld [vmem:[#allocation4 + $0x1a8] sm:$0xf0]  ;;  %v1532_v14 = vld [vmem:[#allocation4 + $0x4] sm:$0xf] }
  0x49   :  { %788 = vmatpush.bf16.msrb.mxu3 %v1390_v45  ;;  %v1554_v45 = vld [vmem:[#allocation4 + $0xb4] sm:$0xf]  ;;  %v1183_v16 = vld [vmem:[#allocation4 + $0x8] sm:$0xf0]  ;;  %v1548_v17 = vld [vmem:[#allocation4 + $0x84] sm:$0xf] }
  0x4a   :  { %747 = vmatpush.bf16.msrb.mxu0 %v1190_v44  ;;  %v1207_v44 = vld [vmem:[#allocation4 + $0x38] sm:$0xf0]  ;;  %v1274_v48 = vor.u32 %v1554_v45, %v1271_v47  ;;  %v1550_v5 = vld [vmem:[#allocation4 + $0x94] sm:$0xf]  ;;  %v1247_v18 = vld [vmem:[#allocation4 + $0x88] sm:$0xf0] }
  0x4b   :  { %761 = vmatpush.bf16.msrb.mxu1 %v1254_v46  ;;  %v1210_v46 = vor.u32 %v1538_v43, %v1207_v44  ;;  %v1250_v20 = vor.u32 %v1548_v17, %v1247_v18  ;;  %v1566_v21 = vld [vmem:[#allocation4 + $0x114] sm:$0xf]  ;;  %v1319_v22 = vld [vmem:[#allocation4 + $0x118] sm:$0xf0]  ;;  %v1564_v29 = vld [vmem:[#allocation4 + $0x104] sm:$0xf] }
  0x4c   :  { %775 = vmatpush.bf16.msrb.mxu2 %v1318_v61  ;;  %v1570_v61 = vld [vmem:[#allocation4 + $0x134] sm:$0xf]  ;;  %v1322_v25 = vor.u32 %v1566_v21, %v1319_v22  ;;  %v1580_v31 = vld [vmem:[#allocation4 + $0x184] sm:$0xf]  ;;  %v1375_v35 = vld [vmem:[#allocation4 + $0x188] sm:$0xf0] }
  0x4d   :  { %789 = vmatpush.bf16.msrb.mxu3 %v1382_v0  ;;  %v1338_v0 = vor.u32 %v1570_v61, %v1335_v62  ;;  %v1378_v37 = vor.u32 %v1580_v31, %v1375_v35 }
  0x4e   :  { %748 = vmatpush.bf16.msrb.mxu0 %v1182_v51  ;;  %v1588_v51 = vld [vmem:[#allocation4 + $0x1c4] sm:$0xf] }
  0x4f   :  { %762 = vmatpush.bf16.msrb.mxu1 %v1246_v52  ;;  %v1346_v52 = vor.u32 %v1572_v49, %v1343_v50  ;;  %v1410_v54 = vor.u32 %v1588_v51, %v1407_v53 }
  0x50   :  { %776 = vmatpush.bf16.msrb.mxu2 %v1310_v11  ;;  %v1330_v11 = vor.u32 %v1568_v8, %v1327_v9  ;;  %v1611_v8 = vld [vmem:[#allocation6 + $0x78] sm:$0xff]  ;;  %v415_v9 = vld [vmem:[%s1800_s4] sm:$0x3] }
  0x51   :  { %790 = vmatpush.bf16.msrb.mxu3 %v1374_v12  ;;  %v1584_v12 = vld [vmem:[#allocation4 + $0x1a4] sm:$0xf]  ;;  %v418_v31 = vperm.slane %v415_v9, 1 }
  0x52   :  { %797 = vmatpush.bf16.msra.mxu0 %v1242_v56  ;;  %v1199_v56 = vld [vmem:[#allocation4 + $0x28] sm:$0xf0] }
  0x53   :  { %811 = vmatpush.bf16.msra.mxu1 %v1306_v60  ;;  %v1202_v58 = vor.u32 %v1536_v55, %v1199_v56  ;;  %v1266_v60 = vor.u32 %v1552_v57, %v1263_v59 }
  0x54   :  { %825 = vmatpush.bf16.msra.mxu2 %v1370_v15  ;;  %v1394_v15 = vor.u32 %v1584_v12, %v1391_v13  ;;  %v1610_v12 = vld [vmem:[#allocation6 + $0x70] sm:$0xff] }
  0x55   :  { %839 = vmatpush.bf16.msra.mxu3 %v1434_v19  ;;  %v1186_v19 = vor.u32 %v1532_v14, %v1183_v16  ;;  %v1609_v16 = vld [vmem:[#allocation6 + $0x68] sm:$0xff] }
  0x56   :  { %798 = vmatpush.bf16.msra.mxu0 %v1234_v3  ;;  %v1534_v3 = vld [vmem:[#allocation4 + $0x14] sm:$0xf] }
  0x57   :  { %812 = vmatpush.bf16.msra.mxu1 %v1298_v7  ;;  %v1194_v6 = vor.u32 %v1534_v3, %v1191_v4  ;;  %v1255_v7 = vld [vmem:[#allocation4 + $0x98] sm:$0xf0]  ;;  %v1602_v3 = vld [vmem:[#allocation6 + $0x30] sm:$0xff]  ;;  %v1601_v4 = vld [vmem:[#allocation6 + $0x28] sm:$0xff] }
  0x58   :  { %826 = vmatpush.bf16.msra.mxu2 %v1362_v27  ;;  %v1258_v10 = vor.u32 %v1550_v5, %v1255_v7  ;;  %v107_v27 = vld [vmem:[%s1798_s2] sm:$0xf]  ;;  %v1599_v7 = vld [vmem:[#allocation6 + $0x18] sm:$0xff] }
  0x59   :  { %840 = vmatpush.bf16.msra.mxu3 %v1426_v30  ;;  %v1311_v30 = vld [vmem:[#allocation4 + $0x108] sm:$0xf0]  ;;  %v109_v32 = vperm.slane %v107_v27, 0  ;;  %v111_v47 = vperm.slane %v107_v27, 2  ;;  %v112_v49 = vperm.slane %v107_v27, 3  ;;  %v1600_v5 = vld [vmem:[#allocation6 + $0x20] sm:$0xff] }
  0x5a   :  { %799 = vmatpush.bf16.msra.mxu0 %v1226_v23  ;;  %v1582_v23 = vld [vmem:[#allocation4 + $0x194] sm:$0xf] }
  0x5b   :  { %813 = vmatpush.bf16.msra.mxu1 %v1290_v24  ;;  %v1383_v24 = vld [vmem:[#allocation4 + $0x198] sm:$0xf0] }
  0x5c   :  { %827 = vmatpush.bf16.msra.mxu2 %v1354_v40  ;;  %v1386_v26 = vor.u32 %v1582_v23, %v1383_v24 }
  0x5d   :  { %841 = vmatpush.bf16.msra.mxu3 %v1418_v42 }
  0x5e   :  { %800 = vmatpush.bf16.msra.mxu0 %v1218_v34  ;;  %v1314_v34 = vor.u32 %v1564_v29, %v1311_v30 }
  0x5f   :  { %814 = vmatpush.bf16.msra.mxu1 %v1282_v36  ;;  %v110_v36 = vperm.slane %v107_v27, 1  ;;  %v1607_v27 = vld [vmem:[#allocation6 + $0x58] sm:$0xff] }
  0x60   :  { %828 = vmatpush.bf16.msra.mxu2 %v1346_v52 }
  0x61   :  { %842 = vmatpush.bf16.msra.mxu3 %v1410_v54 }
  0x62   :  { %801 = vmatpush.bf16.msra.mxu0 %v1210_v46 }
  0x63   :  { %815 = vmatpush.bf16.msra.mxu1 %v1274_v48 }
  0x64   :  { %829 = vmatpush.bf16.msra.mxu2 %v1338_v0 }
  0x65   :  { %843 = vmatpush.bf16.msra.mxu3 %v1402_v2  ;;  %v1603_v2 = vld [vmem:[#allocation6 + $0x38] sm:$0xff] }
  0x66   :  { %802 = vmatpush.bf16.msra.mxu0 %v1202_v58 }
  0x67   :  { %816 = vmatpush.bf16.msra.mxu1 %v1266_v60 }
  0x68   :  { %830 = vmatpush.bf16.msra.mxu2 %v1330_v11  ;;  %v1598_v11 = vld [vmem:[#allocation6 + $0x10] sm:$0xff] }
  0x69   :  { %844 = vmatpush.bf16.msra.mxu3 %v1394_v15  ;;  %v1597_v15 = vld [vmem:[#allocation6 + $0x8] sm:$0xff] }
  0x6a   :  { %803 = vmatpush.bf16.msra.mxu0 %v1194_v6 }
  0x6b   :  { %817 = vmatpush.bf16.msra.mxu1 %v1258_v10  ;;  %v417_v10 = vperm.slane %v415_v9, 0 }
  0x6c   :  { %831 = vmatpush.bf16.msra.mxu2 %v1322_v25 }
  0x6d   :  { %845 = vmatpush.bf16.msra.mxu3 %v1386_v26 }
  0x6e   :  { %804 = vmatpush.bf16.msra.mxu0 %v1186_v19  ;;  %v1596_v19 = vld [vmem:[#allocation6] sm:$0xff] }
  0x6f   :  { %818 = vmatpush.bf16.msra.mxu1 %v1250_v20  ;;  %v1608_v20 = vld [vmem:[#allocation6 + $0x60] sm:$0xff] }
  0x70   :  { %832 = vmatpush.bf16.msra.mxu2 %v1314_v34 }
  0x71   :  { %846 = vmatpush.bf16.msra.mxu3 %v1378_v37  ;;  %v1605_v37 = vld [vmem:[#allocation6 + $0x48] sm:$0xff] }
  0xae   :  { %v292_v28 = vpop.f32.mrf.mxu0 }
  0xaf   :  { %v306_v33 = vpop.f32.mrf.mxu1  ;;  %v293_v38 = vadd.f32 %v292_v28, %v109_v32 }
  0xb0   :  { %v307_v39 = vadd.f32 %v306_v33, %v110_v36 }
  0xb1   :  { %v339_v43 = vmax.f32 %v293_v38, 0.0 }
  0xb2   :  { %v340_v46 = vmax.f32 %v307_v39, 0.0 }
  0xb6   :  { %v320_v40 = vpop.f32.mrf.mxu2  ;;  %v294_v42 = vpop.f32.mrf.mxu0 }
  0xb7   :  { %v334_v41 = vpop.f32.mrf.mxu3  ;;  %v295_v44 = vadd.f32 %v294_v42, %v109_v32  ;;  %v308_v45 = vpop.f32.mrf.mxu1  ;;  %v321_v53 = vadd.f32 %v320_v40, %v111_v47  ;;  %v1606_v32 = vld [vmem:[#allocation6 + $0x50] sm:$0xff]  ;;  %v1604_v42 = vld [vmem:[#allocation6 + $0x40] sm:$0xff] }
  0xb8   :  { %v309_v48 = vadd.f32 %v308_v45, %v110_v36  ;;  %v335_v55 = vadd.f32 %v334_v41, %v112_v49 }
  0xb9   :  { %v343_v50 = vmax.f32 %v295_v44, 0.0  ;;  %v341_v60 = vmax.f32 %v321_v53, 0.0 }
  0xba   :  { %v344_v51 = vmax.f32 %v309_v48, 0.0  ;;  %v342_v62 = vmax.f32 %v335_v55, 0.0 }
  0xbb   :  { %v347_v52 = vpack.c.bf16 %v343_v50, %v339_v43 }
  0xbc   :  { %v348_v54 = vpack.c.bf16 %v344_v51, %v340_v46 }
  0xbd   :  { %749 = vmatmul.bf16.vlgmr.msrb.gmra.mxu0 %v347_v52 }
  0xbe   :  { %v322_v56 = vpop.f32.mrf.mxu2  ;;  %763 = vmatmul.bf16.vlgmr.msrb.gmra.mxu1 %v348_v54  ;;  %1007 = vmatpush.bf16.msrb.mxu0 %v1603_v2 }
  0xbf   :  { %v323_v57 = vadd.f32 %v322_v56, %v111_v47  ;;  %v336_v58 = vpop.f32.mrf.mxu3  ;;  %1021 = vmatpush.bf16.msrb.mxu1 %v1611_v8 }
  0xc0   :  { %v337_v59 = vadd.f32 %v336_v58, %v112_v49 }
  0xc1   :  { %v345_v61 = vmax.f32 %v323_v57, 0.0 }
  0xc2   :  { %v346_v63 = vmax.f32 %v337_v59, 0.0  ;;  %1008 = vmatpush.bf16.msrb.mxu0 %v1602_v3 }
  0xc3   :  { %v349_v0 = vpack.c.bf16 %v345_v61, %v341_v60  ;;  %1022 = vmatpush.bf16.msrb.mxu1 %v1610_v12  ;;  %v1626_v12 = vld [vmem:[%s1802_s6] ss:$0 sm:$0xff] }
  0xc4   :  { %v350_v1 = vpack.c.bf16 %v346_v63, %v342_v62 }
  0xc5   :  { %777 = vmatmul.bf16.vlgmr.msrb.gmra.mxu2 %v349_v0 }
  0xc6   :  { %791 = vmatmul.bf16.vlgmr.msrb.gmra.mxu3 %v350_v1  ;;  %1009 = vmatpush.bf16.msrb.mxu0 %v1601_v4 }
  0xc7   :  { %1023 = vmatpush.bf16.msrb.mxu1 %v1609_v16 }
  0xca   :  { %1010 = vmatpush.bf16.msrb.mxu0 %v1600_v5 }
  0xcb   :  { %1024 = vmatpush.bf16.msrb.mxu1 %v1608_v20 }
  0xcd   :  { %805 = vmatmul.bf16.vlgmr.msra.gmra.mxu0 %v347_v52 }
  0xce   :  { %819 = vmatmul.bf16.vlgmr.msra.gmra.mxu1 %v348_v54  ;;  %1011 = vmatpush.bf16.msrb.mxu0 %v1599_v7 }
  0xcf   :  { %1025 = vmatpush.bf16.msrb.mxu1 %v1607_v27 }
  0xd2   :  { %1012 = vmatpush.bf16.msrb.mxu0 %v1598_v11 }
  0xd3   :  { %1026 = vmatpush.bf16.msrb.mxu1 %v1606_v32 }
  0xd5   :  { %833 = vmatmul.bf16.vlgmr.msra.gmra.mxu2 %v349_v0 }
  0xd6   :  { %847 = vmatmul.bf16.vlgmr.msra.gmra.mxu3 %v350_v1  ;;  %1013 = vmatpush.bf16.msrb.mxu0 %v1597_v15 }
  0xd7   :  { %1027 = vmatpush.bf16.msrb.mxu1 %v1605_v37 }
  0xda   :  { %1014 = vmatpush.bf16.msrb.mxu0 %v1596_v19 }
  0xdb   :  { %1028 = vmatpush.bf16.msrb.mxu1 %v1604_v42 }
 0x13a   :  { %v750_v6 = vpop.f32.mrf.mxu0 }
 0x13b   :  { %v764_v13 = vpop.f32.mrf.mxu1  ;;  %v751_v14 = vadd.f32 %v750_v6, %v417_v10 }
 0x13d   :  { %v765_v18 = vadd.f32 %v764_v13, %v751_v14 }
 0x142   :  { %v752_v17 = vpop.f32.mrf.mxu0 }
 0x143   :  { %v766_v24 = vpop.f32.mrf.mxu1  ;;  %v753_v25 = vadd.f32 %v752_v17, %v417_v10 }
 0x145   :  { %v767_v30 = vadd.f32 %v766_v24, %v753_v25 }
 0x148   :  { %v778_v21 = vpop.f32.mrf.mxu2 }
 0x149   :  { %v779_v22 = vadd.f32 %v778_v21, %v765_v18  ;;  %v792_v23 = vpop.f32.mrf.mxu3 }
 0x14a   :  { %v806_v29 = vpop.f32.mrf.mxu0 }
 0x14b   :  { %v793_v26 = vadd.f32 %v792_v23, %v779_v22  ;;  %v807_v38 = vadd.f32 %v806_v29, %v418_v31  ;;  %v820_v40 = vpop.f32.mrf.mxu1 }
 0x14d   :  { %v853_v28 = vsub.f32 0.0, %v793_v26  ;;  %v821_v43 = vadd.f32 %v820_v40, %v807_v38 }
 0x14f   :  { %v857_v33 = vmul.f32 1.442695, %v853_v28 }
 0x150   :  { %v780_v34 = vpop.f32.mrf.mxu2 }
 0x151   :  { %v781_v35 = vadd.f32 %v780_v34, %v767_v30  ;;  %v794_v36 = vpop.f32.mrf.mxu3  ;;  %1627 = vpow2.f32 %v857_v33 }
 0x152   :  { %v808_v45 = vpop.f32.mrf.mxu0 }
 0x153   :  { %v795_v39 = vadd.f32 %v794_v36, %v781_v35  ;;  %v809_v50 = vadd.f32 %v808_v45, %v418_v31  ;;  %v822_v54 = vpop.f32.mrf.mxu1 }
 0x155   :  { %v855_v41 = vsub.f32 0.0, %v795_v39  ;;  %v823_v56 = vadd.f32 %v822_v54, %v809_v50 }
 0x157   :  { %v861_v44 = vmul.f32 1.442695, %v855_v41  ;;  %v1628_v49 = vpop.eup %1627 }
 0x158   :  { %v834_v46 = vpop.f32.mrf.mxu2  ;;  %v865_v52 = vadd.f32 1.0, %v1628_v49 }
 0x159   :  { %1629 = vpow2.f32 %v861_v44  ;;  %v835_v47 = vadd.f32 %v834_v46, %v821_v43  ;;  %v848_v48 = vpop.f32.mrf.mxu3 }
 0x15a   :  { %1631 = vrcp.f32 %v865_v52 }
 0x15b   :  { %v849_v51 = vadd.f32 %v848_v48, %v835_v47 }
 0x15d   :  { %v854_v53 = vsub.f32 0.0, %v849_v51 }
 0x15f   :  { %v1630_v55 = vpop.eup %1629  ;;  %v859_v58 = vmul.f32 1.442695, %v854_v53 }
 0x160   :  { %v867_v57 = vadd.f32 1.0, %v1630_v55  ;;  %v836_v59 = vpop.f32.mrf.mxu2  ;;  %v1632_v0 = vpop.eup %1631 }
 0x161   :  { %v837_v60 = vadd.f32 %v836_v59, %v823_v56  ;;  %v850_v61 = vpop.f32.mrf.mxu3 }
 0x162   :  { %1633 = vrcp.f32 %v867_v57 }
 0x163   :  { %v851_v62 = vadd.f32 %v850_v61, %v837_v60  ;;  %1635 = vpow2.f32 %v859_v58 }
 0x165   :  { %v856_v63 = vsub.f32 0.0, %v851_v62 }
 0x167   :  { %v863_v1 = vmul.f32 1.442695, %v856_v63 }
 0x168   :  { %v1634_v2 = vpop.eup %1633 }
 0x169   :  { %1637 = vpow2.f32 %v863_v1  ;;  %v873_v3 = vpack.c.bf16 %v1634_v2, %v1632_v0  ;;  %v1636_v4 = vpop.eup %1635 }
 0x16a   :  { %v866_v5 = vadd.f32 1.0, %v1636_v4 }
 0x16b   :  { %1015 = vmatmul.bf16.vlgmr.msrb.gmra.mxu0 %v873_v3 }
 0x16c   :  { %1639 = vrcp.f32 %v866_v5 }
 0x16f   :  { %v1638_v6 = vpop.eup %1637 }
 0x170   :  { %v868_v7 = vadd.f32 1.0, %v1638_v6 }
 0x172   :  { %1641 = vrcp.f32 %v868_v7  ;;  %v1640_v8 = vpop.eup %1639 }
 0x178   :  { %v1642_v9 = vpop.eup %1641 }
 0x179   :  { %v874_v10 = vpack.c.bf16 %v1642_v9, %v1640_v8 }
 0x17b   :  { %1029 = vmatmul.bf16.vlgmr.msrb.gmra.mxu1 %v874_v10 }
 0x1e8   :  { %v1016_v11 = vpop.f32.mrf.mxu0 }
 0x1e9   :  { %v1017_v14 = vadd.f32 %v1626_v12, %v1016_v11 }
 0x1f0   :  { %v1018_v15 = vpop.f32.mrf.mxu0 }
 0x1f1   :  { %v1019_v17 = vadd.f32 %v1626_v12, %v1018_v15 }
 0x1f8   :  { %v1030_v13 = vpop.f32.mrf.mxu1 }
 0x1f9   :  { %v1031_v16 = vadd.f32 %v1030_v13, %v1017_v14 }
 0x1fb   :  { %1643 = vtanh.f32 %v1031_v16 }
 0x200   :  { %v1032_v18 = vpop.f32.mrf.mxu1 }
 0x201   :  { %v1033_v19 = vadd.f32 %v1032_v18, %v1019_v17  ;;  %v1644_v20 = vpop.eup %1643 }
 0x203   :  { %1645 = vtanh.f32 %v1033_v19 }
 0x209   :  { %v1646_v21 = vpop.eup %1645 }
 0x20a   :  { %v1615_v22 = vpack.c.bf16 %v1646_v21, %v1644_v20 }
 0x20c   :  { %1616 = vst [vmem:[%s1803_s7] sm:$0xff] %v1615_v22  }
 0x20d   :  { %1045 = vsyncpa [#allocation3], 1 }
 0x20e   :  { %1046 = vsyncpa [#allocation5], 1 }

</bundles_post_ra>
